<compile_context>
chip_gen: v7x
topology: tpu7x:2x2x1
jax: 0.10.0
libtpu: 0.0.40
codegen_flags: <defaults>
</compile_context>

<pallas_src>
import math
from functools import partial

import jax
import jax.numpy as jnp
from jax.experimental import pallas as pl
from jax.experimental.pallas import tpu as pltpu

_LANES = 128


def _round_up(v, m):
    return ((v + m - 1) // m) * m


def _device_defaults():
    """(tile_rows, num_splits) per TPU generation (perf-review tuning)."""
    kind = ""
    try:
        kind = jax.devices()[0].device_kind.lower()
    except Exception:
        pass
    if "v5 lite" in kind or "v5e" in kind or "v5litepod" in kind:
        return 2048, 1      # ~1 MiB blocks; 16 MiB scoped VMEM; single TC
    if "v7" in kind:
        return 8192, 2      # ~4 MiB blocks; split stream across both TensorCores
    return 8192, 1          # v6e & others: ~4 MiB blocks; single TC


def _make_kernel(rows, tile_rows, tiles_total, tiles_per_split, chunk, unroll):
    """Streaming partial-sum kernel: each grid split accumulates into its own
    (1, 8, 128) f32 output block (output-resident accumulator)."""
    n_chunks = tile_rows // chunk

    def kernel(x_ref, o_ref):
        s = pl.program_id(0)          # split index ("parallel")
        i = pl.program_id(1)          # tile index within split ("arbitrary")

        @pl.when(i == 0)
        def _init():
            o_ref[...] = jnp.zeros_like(o_ref)

        # Global tile position; the index_map clamps OOB slots onto the last
        # real tile, and `valid` masks their contribution to zero.
        tile_pos = s * tiles_per_split + i
        row0 = jnp.minimum(tile_pos, tiles_total - 1) * tile_rows
        valid = jnp.where(tile_pos < tiles_total,
                          jnp.clip(rows - row0, 0, tile_rows), 0)

        # Hoisted (JAX does not CSE broadcast_in_dim inside the loop).
        row_iota = jax.lax.broadcasted_iota(jnp.int32, (chunk, _LANES), 0)

        def body(j, acc):
            r = pl.multiple_of(j * chunk, chunk)
            xb = x_ref[pl.ds(r, chunk), :].astype(jnp.float32)   # upcast in-kernel
            xb = jnp.where(row_iota < (valid - r), xb, 0.0)      # ragged-tail mask
            return acc + jnp.sum(xb.reshape(chunk // 8, 8, _LANES), axis=0)

        acc = jax.lax.fori_loop(0, n_chunks, body,
                                jnp.zeros((8, _LANES), jnp.float32),
                                unroll=unroll)
        o_ref[...] += acc[None, :, :]

    return kernel


@partial(jax.jit, static_argnames=("tile_rows", "num_splits"))
def _mynet_forward_impl(x_nchw, conv_weight, *, tile_rows, num_splits):
    n, c, h, w = x_nchw.shape
    assert c == 1, "MyNet.conv1 expects a single input channel"
    total = n * h * w

    w_sum = jnp.sum(conv_weight.astype(jnp.float32))   # (w0 + w1)
    x_flat = x_nchw.reshape(-1)                        # native dtype, no copy under jit

    if total % _LANES != 0:
        # Fallback only: pad by < 128 elements so a (rows, 128) view exists.
        # (This is the only path that materializes a copy of x.)
        x_flat = jnp.pad(x_flat, (0, (-total) % _LANES))

    rows = (total + _LANES - 1) // _LANES
    if rows < 8:
        # Tiny input: a kernel launch is not worth it.
        return jnp.abs(w_sum * jnp.sum(x_flat.astype(jnp.float32)))

    x2d = x_flat.reshape(rows, _LANES)                 # lane-dense view (bitcast under jit)

    tile_rows = max(8, min(_round_up(int(tile_rows), 8), _round_up(rows, 8)))
    assert tile_rows % 8 == 0                          # required by the (…,8,128) reshape

    tiles_total = (rows + tile_rows - 1) // tile_rows
    num_splits = max(1, min(int(num_splits), tiles_total))
    tiles_per_split = (tiles_total + num_splits - 1) // num_splits

    chunk = math.gcd(tile_rows, 64)                    # 8..64 rows per inner chunk
    unroll = max(1, min(8, tile_rows // chunk))

    kernel = _make_kernel(rows, tile_rows, tiles_total, tiles_per_split, chunk, unroll)

    x_index_map = lambda s, i: (jnp.minimum(s * tiles_per_split + i, tiles_total - 1), 0)

    partials = pl.pallas_call(
        kernel,
        out_shape=jax.ShapeDtypeStruct((num_splits, 8, _LANES), jnp.float32),
        grid_spec=pltpu.PrefetchScalarGridSpec(
            num_scalar_prefetch=0,
            grid=(num_splits, tiles_per_split),
            in_specs=[pl.BlockSpec((tile_rows, _LANES), x_index_map)],
            out_specs=pl.BlockSpec((1, 8, _LANES), lambda s, i: (s, 0, 0)),
        ),
        compiler_params=pltpu.CompilerParams(
            dimension_semantics=("parallel", "arbitrary"),
        ),
        cost_estimate=pl.CostEstimate(
            flops=2 * rows * _LANES,
            transcendentals=0,
            bytes_accessed=rows * _LANES * x2d.dtype.itemsize
            + num_splits * 8 * _LANES * 4,
        ),
    )(x2d)

    # Tiny epilogue in the wrapper: combine split partials, scale, abs.
    return jnp.abs(w_sum * jnp.sum(partials))


def mynet_forward(x_nchw, conv_weight, *, tile_rows=None, num_splits=None):
    """x_nchw: (N, 1, H, W); conv_weight: (2, 1, 1, 1) -> scalar f32 = abs(sum(conv1x1(x)))."""
    d_tile, d_splits = _device_defaults()
    tile_rows = d_tile if tile_rows is None else int(tile_rows)
    num_splits = d_splits if num_splits is None else int(num_splits)
    return _mynet_forward_impl(x_nchw, conv_weight,
                               tile_rows=tile_rows, num_splits=num_splits)


if __name__ == "__main__":
    key = jax.random.PRNGKey(0)
    k_x, k_w, k_x2, k_x3 = jax.random.split(key, 4)

    def ref_forward(x_nchw, cw):
        # Explicit 1x1 conv (2 output channels) -> sum -> abs, without the
        # algebraic shortcut used inside the kernel.
        y = x_nchw[:, 0][:, None, :, :] * cw.reshape(1, 2, 1, 1)
        return jnp.abs(jnp.sum(y.astype(jnp.float32)))

    # conv1 weight: (out=2, in=1, kh=1, kw=1), no bias.
    conv_w = jax.random.normal(k_w, (2, 1, 1, 1), dtype=jnp.float32) * 0.5

    # 1) Zero-copy path, single tile (numel % 128 == 0).
    x = jax.random.normal(k_x, (2, 1, 64, 64), dtype=jnp.float32)
    out = jax.block_until_ready(mynet_forward(x, conv_w))
    ref = ref_forward(x, conv_w)
    assert jnp.allclose(out, ref, rtol=1e-3, atol=1e-3), (out, ref)

    # 2) Multi-tile grid + ragged last block + explicit 2-way split
    #    (exercises cross-step accumulation, masking and the parallel axis).
    x2 = jax.random.normal(k_x2, (3, 1, 40, 64), dtype=jnp.float32)   # 7680 elems = 60 rows
    out2 = jax.block_until_ready(mynet_forward(x2, conv_w, tile_rows=16, num_splits=2))
    ref2 = ref_forward(x2, conv_w)
    assert jnp.allclose(out2, ref2, rtol=1e-3, atol=1e-3), (out2, ref2)

    # 3) bf16 input streamed natively (half the HBM bytes), f32 accumulate in-kernel.
    x3 = jax.random.normal(k_x3, (2, 1, 32, 64), dtype=jnp.bfloat16)  # 4096 elems = 32 rows
    out3 = jax.block_until_ready(mynet_forward(x3, conv_w, tile_rows=8))
    ref3 = ref_forward(x3, conv_w)
    assert jnp.allclose(out3, ref3, rtol=2e-2, atol=2e-2), (out3, ref3)

    print("KERNEL_OK")
</pallas_src>

<mosaic_0001>
module attributes {stable_mosaic.version = 11 : i64} {
  func.func @kernel(%arg0: i32, %arg1: i32, %arg2: memref<64x128xf32, #tpu.memory_space<vmem>>, %arg3: memref<1x8x128xf32, #tpu.memory_space<vmem>>) attributes {dimension_semantics = [#tpu.dimension_semantics<parallel>, #tpu.dimension_semantics<arbitrary>], iteration_bounds = array<i64: 1, 1>, scalar_prefetch = 0 : i64, scratch_operands = 0 : i64, tpu.core_type = #tpu.core_type<tc>, window_params = [{transform_indices = @transform_0, window_bounds = array<i64: 64, 128>}, {transform_indices = @transform_1, window_bounds = array<i64: 1, 8, 128>}]} {
    %c0_i32 = arith.constant 0 : i32
    %0 = arith.cmpi eq, %arg1, %c0_i32 : i32
    %1 = arith.extui %0 : i1 to i32
    %c0_i32_0 = arith.constant 0 : i32
    %2 = arith.cmpi ne, %1, %c0_i32_0 : i32
    scf.if %2 {
      %cst_18 = arith.constant 0.000000e+00 : f32
      %30 = vector.broadcast %cst_18 : f32 to vector<1x8x128xf32>
      %c0_19 = arith.constant 0 : index
      %c0_20 = arith.constant 0 : index
      %c0_21 = arith.constant 0 : index
      %31 = vector.load %arg3[%c0_19, %c0_20, %c0_21] : memref<1x8x128xf32, #tpu.memory_space<vmem>>, vector<1x8x128xf32>
      tpu.vector_store %arg3[%c0_19, %c0_20, %c0_21], %30 {strides = array<i32>} : memref<1x8x128xf32, #tpu.memory_space<vmem>>, vector<1x8x128xf32>,
    } else {
    }
    %c1_i32 = arith.constant 1 : i32
    %3 = arith.muli %arg0, %c1_i32 : i32
    %4 = arith.addi %3, %arg1 : i32
    %c0_i32_1 = arith.constant 0 : i32
    %5 = arith.minsi %4, %c0_i32_1 : i32
    %c64_i32 = arith.constant 64 : i32
    %6 = arith.muli %5, %c64_i32 : i32
    %c1_i32_2 = arith.constant 1 : i32
    %7 = arith.cmpi slt, %4, %c1_i32_2 : i32
    %c64_i32_3 = arith.constant 64 : i32
    %8 = arith.subi %c64_i32_3, %6 : i32
    %c0_i32_4 = arith.constant 0 : i32
    %c64_i32_5 = arith.constant 64 : i32
    %9 = arith.maxsi %c0_i32_4, %8 : i32
    %10 = arith.minsi %c64_i32_5, %9 : i32
    %c0_i32_6 = arith.constant 0 : i32
    %11 = arith.select %7, %10, %c0_i32_6 : i32
    %12 = tpu.iota {dimensions = array<i32: 0>} : vector<64x128xi32>
    %cst = arith.constant 0.000000e+00 : f32
    %13 = vector.broadcast %cst : f32 to vector<8x128xf32>
    %c0_i32_7 = arith.constant 0 : i32
    %c64_i32_8 = arith.constant 64 : i32
    %14 = arith.muli %c0_i32_7, %c64_i32_8 : i32
    %15 = tpu.assume_multiple %14, 64 : i32
    %16 = arith.index_cast %15 : i32 to index
    %c0 = arith.constant 0 : index
    %17 = vector.load %arg2[%16, %c0] : memref<64x128xf32, #tpu.memory_space<vmem>>, vector<64x128xf32>
    %18 = arith.subi %11, %15 : i32
    %19 = vector.broadcast %18 : i32 to vector<64x128xi32>
    %20 = arith.cmpi slt, %12, %19 : vector<64x128xi32>
    %cst_9 = arith.constant 0.000000e+00 : f32
    %21 = vector.broadcast %cst_9 : f32 to vector<64x128xf32>
    %22 = arith.select %20, %17, %21 : vector<64x128xi1>, vector<64x128xf32>
    %23 = vector.shape_cast %22 : vector<64x128xf32> to vector<8x8x128xf32>
    %cst_10 = arith.constant dense<0.000000e+00> : vector<8x128xf32>
    %24 = vector.multi_reduction <add>, %23, %cst_10 [0] : vector<8x8x128xf32> to vector<8x128xf32>
    %25 = arith.addf %13, %24 : vector<8x128xf32>
    %c1_i32_11 = arith.constant 1 : i32
    %c0_12 = arith.constant 0 : index
    %c0_13 = arith.constant 0 : index
    %c0_14 = arith.constant 0 : index
    %26 = vector.load %arg3[%c0_12, %c0_13, %c0_14] : memref<1x8x128xf32, #tpu.memory_space<vmem>>, vector<1x8x128xf32>
    %27 = vector.shape_cast %25 : vector<8x128xf32> to vector<1x8x128xf32>
    %28 = arith.addf %26, %27 : vector<1x8x128xf32>
    %c0_15 = arith.constant 0 : index
    %c0_16 = arith.constant 0 : index
    %c0_17 = arith.constant 0 : index
    %29 = vector.load %arg3[%c0_15, %c0_16, %c0_17] : memref<1x8x128xf32, #tpu.memory_space<vmem>>, vector<1x8x128xf32>
    tpu.vector_store %arg3[%c0_15, %c0_16, %c0_17], %28 {strides = array<i32>} : memref<1x8x128xf32, #tpu.memory_space<vmem>>, vector<1x8x128xf32>,
    return
  }
  func.func @transform_0(%arg0: i32, %arg1: i32) -> (i32, i32) {
    %c1_i32 = arith.constant 1 : i32
    %0 = arith.muli %arg0, %c1_i32 : i32
    %1 = arith.addi %0, %arg1 : i32
    %c0_i32 = arith.constant 0 : i32
    %2 = arith.minsi %1, %c0_i32 : i32
    %c0_i32_0 = arith.constant 0 : i32
    %c0_i32_1 = arith.constant 0 : i32
    return %2, %c0_i32_0 : i32, i32
  }
  func.func @transform_1(%arg0: i32, %arg1: i32) -> (i32, i32, i32) {
    %c0_i32 = arith.constant 0 : i32
    %c0_i32_0 = arith.constant 0 : i32
    %c0_i32_1 = arith.constant 0 : i32
    return %arg0, %c0_i32, %c0_i32_0 : i32, i32, i32
  }
}

</mosaic_0001>

<bundles_post_ra>
// kernel: _mynet_forward_impl.1
= control target key start
LH: loop header
LB: loop body
LE: loop exit
PB: predicated region body
PF: predicated region fallthrough
CT: control target
= control target key end

     0   :  { %s150_s0 = inlined_call_operand.vmem [shape: f32[64,128], index: 0, kind: input, shape index: {}]   ;;  %s151_s1 = inlined_call_operand.vmem [shape: f32[1,8,128], index: 1, kind: output, shape index: {}]  }
   0x1   :  { %v65_v0 = vld [vmem:[%s150_s0] sm:$0xff]  ;;  %v66_v1 = vld [vmem:[%s150_s0 + $0x8] sm:$0xff]  ;;  %v67_v2 = vld [vmem:[%s150_s0 + $0x10] sm:$0xff] }
   0x2   :  { %v91_v3 = vadd.f32 %v66_v1, %v65_v0  ;;  %v68_v4 = vld [vmem:[%s150_s0 + $0x18] sm:$0xff]  ;;  %v69_v6 = vld [vmem:[%s150_s0 + $0x20] sm:$0xff]  ;;  %v70_v8 = vld [vmem:[%s150_s0 + $0x28] sm:$0xff] }
   0x3   :  { %v71_v10 = vld [vmem:[%s150_s0 + $0x30] sm:$0xff]  ;;  %v72_v12 = vld [vmem:[%s150_s0 + $0x38] sm:$0xff] }
   0x4   :  { %v92_v5 = vadd.f32 %v91_v3, %v67_v2 }
   0x6   :  { %v93_v7 = vadd.f32 %v92_v5, %v68_v4 }
   0x8   :  { %v94_v9 = vadd.f32 %v93_v7, %v69_v6 }
   0xa   :  { %v95_v11 = vadd.f32 %v94_v9, %v70_v8 }
   0xc   :  { %v96_v13 = vadd.f32 %v95_v11, %v71_v10 }
   0xe   :  { %v97_v14 = vadd.f32 %v96_v13, %v72_v12 }
  0x10   :  { %101 = vst [vmem:[%s151_s1] sm:$0xff] %v97_v14 }

</bundles_post_ra>
